<compile_context>
chip_gen: v5e
topology: v5e:2x2
jax: 0.10.0
libtpu: 0.0.40
codegen_flags: <defaults>
</compile_context>

<pallas_src>
import functools

import jax
import jax.numpy as jnp
from jax import lax
from jax.experimental import pallas as pl
from jax.experimental.pallas import tpu as pltpu

_LANES = 128
_FUSED_MAX_ROWS = 512          # tensors with <=512*128 elems (256 KiB f32) use the fused path


def _round_up(x, m):
    return ((x + m - 1) // m) * m


def _small_rows(n):
    """Padded row count (multiple of 8) for an n-element tensor."""
    return _round_up(-(-n // _LANES), 8)


@functools.lru_cache(maxsize=None)
def _block_config():
    """Generation-aware streaming block rows budget + scoped-VMEM limit."""
    vmem_cap = 64 * 1024 * 1024                    # conservative default (v7x per-TC VMEM)
    try:
        info = pltpu.get_tpu_info()
        vmem_cap = int(getattr(info, "vmem_capacity_bytes", vmem_cap)) or vmem_cap
    except Exception:
        pass
    # ~8 MiB double-buffered blocks amortize the ~0.35us per-grid-step overhead
    # to <~15% even at v7x's ~3.2 TB/s HBM, while 2 buffers + in-kernel temps
    # stay well inside 64 MiB (v7x) / 128 MiB (v5e/v6e) physical VMEM.
    blk_bytes = int(min(8 * 1024 * 1024, max(1 * 1024 * 1024, vmem_cap // 8)))
    vmem_limit = int(min(vmem_cap * 5 // 8, 2 * blk_bytes + 24 * 1024 * 1024))
    return blk_bytes, vmem_limit


# ----------------------------------------------------------------------------
# Kernels
# ----------------------------------------------------------------------------
def _fused_stats_kernel(nvalid_ref, x_ref, out_ref):
    """grid = (num_tensors,).  One (tile_rows,128) slab per tensor, masked by the
    scalar-prefetched valid-element count; raw (8,128) sum/max partials are
    written out and reduced across lanes in the wrapper."""
    k = pl.program_id(0)
    nv = nvalid_ref[k]                                         # SMEM scalar read
    x = x_ref[0].astype(jnp.float32)                           # (tile_rows, 128)
    t = x.shape[0]
    idx = (lax.broadcasted_iota(jnp.int32, (t, _LANES), 0) * _LANES
           + lax.broadcasted_iota(jnp.int32, (t, _LANES), 1))
    valid = idx < nv
    xs = jnp.where(valid, x, jnp.float32(0.0)).reshape(t // 8, 8, _LANES)
    xm = jnp.where(valid, x, jnp.float32(-jnp.inf)).reshape(t // 8, 8, _LANES)
    out_ref[0, 0] = jnp.sum(xs, axis=0)                        # leading-axis VPU reduce
    out_ref[0, 1] = jnp.max(xm, axis=0)


def _stream_stats_kernel(x_ref, out_ref, acc_sum, acc_max):
    """grid = (nb,) 1-D streaming reduction.  Every block is full (no masking):
    the sub-block remainder is folded into the scalar combine in the wrapper.
    Pure VPU accumulation into (8,128) scratch; raw accumulators stored once."""
    i = pl.program_id(0)

    @pl.when(i == 0)
    def _init():
        acc_sum[...] = jnp.zeros_like(acc_sum)
        acc_max[...] = jnp.full_like(acc_max, -jnp.inf)

    x = x_ref[...].astype(jnp.float32)                         # (tile_rows, 128)
    t = x.shape[0]
    x3 = x.reshape(t // 8, 8, _LANES)
    acc_sum[...] = acc_sum[...] + jnp.sum(x3, axis=0)
    acc_max[...] = jnp.maximum(acc_max[...], jnp.max(x3, axis=0))

    @pl.when(i == pl.num_programs(0) - 1)
    def _finalize():
        out_ref[0, 0] = acc_sum[...]
        out_ref[0, 1] = acc_max[...]


# ----------------------------------------------------------------------------
# Wrappers
# ----------------------------------------------------------------------------
@functools.partial(jax.jit, static_argnames=("tile_rows",))
def _fused_stats(tensors, *, tile_rows):
    """One pallas_call for a whole list of small tensors."""
    num_t = len(tensors)
    slabs, counts = [], []
    for t in tensors:                                          # small tensors: cheap pack
        flat = t.reshape(-1).astype(jnp.float32)
        counts.append(flat.shape[0])
        pad = tile_rows * _LANES - flat.shape[0]
        slabs.append(jnp.pad(flat, (0, pad)).reshape(tile_rows, _LANES))
    packed = jnp.stack(slabs)                                  # (T, tile_rows, 128)
    nvalid = jnp.asarray(counts, dtype=jnp.int32)

    partials = pl.pallas_call(
        _fused_stats_kernel,
        out_shape=jax.ShapeDtypeStruct((num_t, 2, 8, _LANES), jnp.float32),
        grid_spec=pltpu.PrefetchScalarGridSpec(
            num_scalar_prefetch=1,
            grid=(num_t,),
            in_specs=[pl.BlockSpec((1, tile_rows, _LANES), lambda k, nv: (k, 0, 0))],
            out_specs=pl.BlockSpec((1, 2, 8, _LANES), lambda k, nv: (k, 0, 0, 0)),
        ),
        compiler_params=pltpu.CompilerParams(dimension_semantics=("parallel",)),
        cost_estimate=pl.CostEstimate(
            flops=2 * num_t * tile_rows * _LANES, transcendentals=0,
            bytes_accessed=num_t * (tile_rows * _LANES * 4 + 2 * 8 * _LANES * 4)),
    )(nvalid, packed)

    sums = jnp.sum(partials[:, 0], axis=(1, 2))
    maxs = jnp.max(partials[:, 1], axis=(1, 2))
    means = sums / jnp.asarray(counts, dtype=jnp.float32)
    return sums, means, maxs


@functools.partial(jax.jit, static_argnames=("tile_rows", "vmem_limit"))
def _stream_stats_jit(x, *, tile_rows, vmem_limit):
    """Streaming reduction for one large tensor (no pad copy, no masked block)."""
    n = x.size                                                 # static python int
    xf = x.reshape(-1)
    rows = n // _LANES
    nb = rows // tile_rows
    rows_main = nb * tile_rows
    x2d = xf[: rows * _LANES].reshape(rows, _LANES)            # free when n % 128 == 0

    itemsize = jnp.dtype(x.dtype).itemsize
    partial = pl.pallas_call(
        _stream_stats_kernel,
        out_shape=jax.ShapeDtypeStruct((1, 2, 8, _LANES), jnp.float32),
        grid_spec=pltpu.PrefetchScalarGridSpec(
            num_scalar_prefetch=0,
            grid=(nb,),
            in_specs=[pl.BlockSpec((tile_rows, _LANES), lambda i: (i, 0))],
            out_specs=pl.BlockSpec((1, 2, 8, _LANES), lambda i: (0, 0, 0, 0)),
            scratch_shapes=[pltpu.VMEM((8, _LANES), jnp.float32),   # running sum
                            pltpu.VMEM((8, _LANES), jnp.float32)],  # running max
        ),
        compiler_params=pltpu.CompilerParams(
            dimension_semantics=("arbitrary",),
            vmem_limit_bytes=vmem_limit),
        cost_estimate=pl.CostEstimate(
            flops=2 * rows_main * _LANES, transcendentals=0,
            bytes_accessed=rows_main * _LANES * itemsize + 2 * 8 * _LANES * 4),
    )(x2d)

    total = jnp.sum(partial[0, 0])
    maximum = jnp.max(partial[0, 1])

    # Remainder rows (< tile_rows) plus any <128-element ragged tail: tiny jnp
    # combine in the wrapper instead of a full-array jnp.pad or a giant
    # in-kernel mask.
    rem = xf[rows_main * _LANES:]
    if rem.shape[0] > 0:
        rem = rem.astype(jnp.float32)
        total = total + jnp.sum(rem)
        maximum = jnp.maximum(maximum, jnp.max(rem))

    mean = total / jnp.float32(n)
    return total, mean, maximum


def _stream_stats(x):
    n = int(x.size)
    rows = n // _LANES
    blk_bytes, vmem_limit = _block_config()
    target_rows = max(8, (blk_bytes // (_LANES * 4)) // 8 * 8)
    tile_rows = max(8, min(target_rows, (rows // 8) * 8))
    return _stream_stats_jit(x, tile_rows=tile_rows, vmem_limit=vmem_limit)


def pt_module_forward(inputs):
    """Mirrors PtModule.forward: list of tensors -> list of (sum, mean, max)."""
    tensors = [jnp.asarray(t) for t in inputs]
    results = [None] * len(tensors)

    small_idx, small_tensors = [], []
    for i, t in enumerate(tensors):
        n = int(t.size)
        if n == 0:
            raise ValueError("max()/mean() of an empty tensor is undefined (torch raises too)")
        if _small_rows(n) <= _FUSED_MAX_ROWS:
            small_idx.append(i)
            small_tensors.append(t)
        else:
            results[i] = _stream_stats(t)

    if small_tensors:
        tile_rows = max(_small_rows(int(t.size)) for t in small_tensors)
        sums, means, maxs = _fused_stats(tuple(small_tensors), tile_rows=tile_rows)
        for j, i in enumerate(small_idx):
            results[i] = (sums[j], means[j], maxs[j])

    return results


def tensor_stats(x):
    """Pallas equivalent of (torch.sum(x), torch.mean(x), torch.max(x))."""
    return pt_module_forward([x])[0]


if __name__ == "__main__":
    key = jax.random.PRNGKey(0)
    k0, k1, k2, k3 = jax.random.split(key, 4)
    inputs = [
        jax.random.normal(k0, (2, 4, 16, 16), dtype=jnp.float32),   # fused path
        jax.random.normal(k1, (8, 32), dtype=jnp.float32),          # fused path
        jax.random.uniform(k2, (127,), dtype=jnp.float32),          # fused, ragged mask
        jax.random.normal(k3, (255, 517), dtype=jnp.float32),       # streaming + jnp tail
    ]

    outputs = pt_module_forward(inputs)
    outputs = jax.block_until_ready(outputs)

    ok = True
    for t, (s, m, mx) in zip(inputs, outputs):
        ok &= bool(jnp.allclose(s, jnp.sum(t), rtol=2e-4, atol=1e-2))
        ok &= bool(jnp.allclose(m, jnp.mean(t), rtol=1e-4, atol=1e-5))
        ok &= bool(jnp.allclose(mx, jnp.max(t), rtol=1e-5, atol=1e-5))
    assert ok, "mismatch vs reference"

    print("KERNEL_OK")
</pallas_src>

<mosaic_0001>
module attributes {stable_mosaic.version = 11 : i64} {
  func.func @_stream_stats_kernel(%arg0: i32, %arg1: memref<1024x128xf32, #tpu.memory_space<vmem>>, %arg2: memref<1x2x8x128xf32, #tpu.memory_space<vmem>>, %arg3: memref<8x128xf32, #tpu.memory_space<vmem>>, %arg4: memref<8x128xf32, #tpu.memory_space<vmem>>) attributes {dimension_semantics = [#tpu.dimension_semantics<arbitrary>], iteration_bounds = array<i64: 1>, scalar_prefetch = 0 : i64, scratch_operands = 2 : i64, tpu.core_type = #tpu.core_type<tc>, window_params = [{transform_indices = @transform_0, window_bounds = array<i64: 1024, 128>}, {pipeline_mode = #tpu.pipeline_mode<synchronous>, transform_indices = @transform_1, window_bounds = array<i64: 1, 2, 8, 128>}]} {
    %c0_i32 = arith.constant 0 : i32
    %0 = arith.cmpi eq, %arg0, %c0_i32 : i32
    %1 = arith.extui %0 : i1 to i32
    %c0_i32_0 = arith.constant 0 : i32
    %2 = arith.cmpi ne, %1, %c0_i32_0 : i32
    scf.if %2 {
      %cst_13 = arith.constant 0.000000e+00 : f32
      %16 = vector.broadcast %cst_13 : f32 to vector<8x128xf32>
      %c0_14 = arith.constant 0 : index
      %c0_15 = arith.constant 0 : index
      %17 = vector.load %arg3[%c0_14, %c0_15] : memref<8x128xf32, #tpu.memory_space<vmem>>, vector<8x128xf32>
      tpu.vector_store %arg3[%c0_14, %c0_15], %16 {strides = array<i32>} : memref<8x128xf32, #tpu.memory_space<vmem>>, vector<8x128xf32>,
      %cst_16 = arith.constant 0xFF800000 : f32
      %18 = vector.broadcast %cst_16 : f32 to vector<8x128xf32>
      %c0_17 = arith.constant 0 : index
      %c0_18 = arith.constant 0 : index
      %19 = vector.load %arg4[%c0_17, %c0_18] : memref<8x128xf32, #tpu.memory_space<vmem>>, vector<8x128xf32>
      tpu.vector_store %arg4[%c0_17, %c0_18], %18 {strides = array<i32>} : memref<8x128xf32, #tpu.memory_space<vmem>>, vector<8x128xf32>,
    } else {
    }
    %c0 = arith.constant 0 : index
    %c0_1 = arith.constant 0 : index
    %3 = vector.load %arg1[%c0, %c0_1] : memref<1024x128xf32, #tpu.memory_space<vmem>>, vector<1024x128xf32>
    %4 = vector.shape_cast %3 : vector<1024x128xf32> to vector<128x8x128xf32>
    %c0_2 = arith.constant 0 : index
    %c0_3 = arith.constant 0 : index
    %5 = vector.load %arg3[%c0_2, %c0_3] : memref<8x128xf32, #tpu.memory_space<vmem>>, vector<8x128xf32>
    %cst = arith.constant dense<0.000000e+00> : vector<8x128xf32>
    %6 = vector.multi_reduction <add>, %4, %cst [0] : vector<128x8x128xf32> to vector<8x128xf32>
    %7 = arith.addf %5, %6 : vector<8x128xf32>
    %c0_4 = arith.constant 0 : index
    %c0_5 = arith.constant 0 : index
    %8 = vector.load %arg3[%c0_4, %c0_5] : memref<8x128xf32, #tpu.memory_space<vmem>>, vector<8x128xf32>
    tpu.vector_store %arg3[%c0_4, %c0_5], %7 {strides = array<i32>} : memref<8x128xf32, #tpu.memory_space<vmem>>, vector<8x128xf32>,
    %c0_6 = arith.constant 0 : index
    %c0_7 = arith.constant 0 : index
    %9 = vector.load %arg4[%c0_6, %c0_7] : memref<8x128xf32, #tpu.memory_space<vmem>>, vector<8x128xf32>
    %cst_8 = arith.constant dense<0xFF800000> : vector<8x128xf32>
    %10 = vector.multi_reduction <maximumf>, %4, %cst_8 [0] : vector<128x8x128xf32> to vector<8x128xf32>
    %11 = arith.maximumf %9, %10 : vector<8x128xf32>
    %c0_9 = arith.constant 0 : index
    %c0_10 = arith.constant 0 : index
    %12 = vector.load %arg4[%c0_9, %c0_10] : memref<8x128xf32, #tpu.memory_space<vmem>>, vector<8x128xf32>
    tpu.vector_store %arg4[%c0_9, %c0_10], %11 {strides = array<i32>} : memref<8x128xf32, #tpu.memory_space<vmem>>, vector<8x128xf32>,
    %c0_i32_11 = arith.constant 0 : i32
    %13 = arith.cmpi eq, %arg0, %c0_i32_11 : i32
    %14 = arith.extui %13 : i1 to i32
    %c0_i32_12 = arith.constant 0 : i32
    %15 = arith.cmpi ne, %14, %c0_i32_12 : i32
    scf.if %15 {
      %c0_13 = arith.constant 0 : index
      %c0_14 = arith.constant 0 : index
      %16 = vector.load %arg3[%c0_13, %c0_14] : memref<8x128xf32, #tpu.memory_space<vmem>>, vector<8x128xf32>
      %c0_15 = arith.constant 0 : index
      %c0_16 = arith.constant 0 : index
      %c0_17 = arith.constant 0 : index
      %c0_18 = arith.constant 0 : index
      %17 = vector.load %arg2[%c0_15, %c0_16, %c0_17, %c0_18] : memref<1x2x8x128xf32, #tpu.memory_space<vmem>>, vector<1x1x8x128xf32>
      %18 = vector.shape_cast %17 : vector<1x1x8x128xf32> to vector<8x128xf32>
      %19 = vector.shape_cast %16 : vector<8x128xf32> to vector<1x1x8x128xf32>
      tpu.vector_store %arg2[%c0_15, %c0_16, %c0_17, %c0_18], %19 {strides = array<i32>} : memref<1x2x8x128xf32, #tpu.memory_space<vmem>>, vector<1x1x8x128xf32>,
      %c0_19 = arith.constant 0 : index
      %c0_20 = arith.constant 0 : index
      %20 = vector.load %arg4[%c0_19, %c0_20] : memref<8x128xf32, #tpu.memory_space<vmem>>, vector<8x128xf32>
      %c0_21 = arith.constant 0 : index
      %c1 = arith.constant 1 : index
      %c0_22 = arith.constant 0 : index
      %c0_23 = arith.constant 0 : index
      %21 = vector.load %arg2[%c0_21, %c1, %c0_22, %c0_23] : memref<1x2x8x128xf32, #tpu.memory_space<vmem>>, vector<1x1x8x128xf32>
      %22 = vector.shape_cast %21 : vector<1x1x8x128xf32> to vector<8x128xf32>
      %23 = vector.shape_cast %20 : vector<8x128xf32> to vector<1x1x8x128xf32>
      tpu.vector_store %arg2[%c0_21, %c1, %c0_22, %c0_23], %23 {strides = array<i32>} : memref<1x2x8x128xf32, #tpu.memory_space<vmem>>, vector<1x1x8x128xf32>,
    } else {
    }
    return
  }
  func.func @transform_0(%arg0: i32) -> (i32, i32) {
    %c0_i32 = arith.constant 0 : i32
    %c0_i32_0 = arith.constant 0 : i32
    return %arg0, %c0_i32 : i32, i32
  }
  func.func @transform_1(%arg0: i32) -> (i32, i32, i32, i32) {
    %c0_i32 = arith.constant 0 : i32
    %c0_i32_0 = arith.constant 0 : i32
    %c0_i32_1 = arith.constant 0 : i32
    %c0_i32_2 = arith.constant 0 : i32
    %c0_i32_3 = arith.constant 0 : i32
    return %c0_i32, %c0_i32_0, %c0_i32_1, %c0_i32_2 : i32, i32, i32, i32
  }
}

</mosaic_0001>

<bundles_post_ra>
// kernel: _stream_stats_jit.1
= control target key start
LH: loop header
LB: loop body
LE: loop exit
PB: predicated region body
PF: predicated region fallthrough
CT: control target
= control target key end

     0   :  { %s847_s0 = inlined_call_operand.vmem [shape: f32[1029,128], index: 0, kind: input, shape index: {}]   ;;  %s848_s1 = inlined_call_operand.vmem [shape: f32[1,2,8,128], index: 1, kind: output, shape index: {}]  }
   0x1   :  { %v428_v0 = vld [vmem:[%s847_s0] sm:$0xff]  ;;  %v433_v1 = vld [vmem:[%s847_s0 + $0x8] sm:$0xff]  ;;  %v438_v2 = vld [vmem:[%s847_s0 + $0x10] sm:$0xff] }
   0x2   :  { %v143_v3 = vadd.f32 %v433_v1, %v428_v0  ;;  %v445_v4 = vld [vmem:[%s847_s0 + $0x18] sm:$0xff]  ;;  %v22_v5 = vld [vmem:[%s847_s0 + $0x40] sm:$0xff]  ;;  %v23_v6 = vld [vmem:[%s847_s0 + $0x48] sm:$0xff] }
   0x3   :  { %v24_v7 = vld [vmem:[%s847_s0 + $0x50] sm:$0xff]  ;;  %v460_v9 = vld [vmem:[%s847_s0 + $0x20] sm:$0xff]  ;;  %v277_v10 = vmax.f32 %v23_v6, %v22_v5  ;;  %v25_v11 = vld [vmem:[%s847_s0 + $0x58] sm:$0xff] }
   0x4   :  { %v144_v8 = vadd.f32 %v143_v3, %v438_v2  ;;  %v469_v13 = vld [vmem:[%s847_s0 + $0x28] sm:$0xff]  ;;  %v26_v15 = vld [vmem:[%s847_s0 + $0x60] sm:$0xff]  ;;  %v478_v17 = vld [vmem:[%s847_s0 + $0x30] sm:$0xff] }
   0x5   :  { %v278_v14 = vmax.f32 %v24_v7, %v277_v10  ;;  %v27_v19 = vld [vmem:[%s847_s0 + $0x68] sm:$0xff]  ;;  %v487_v21 = vld [vmem:[%s847_s0 + $0x38] sm:$0xff]  ;;  %v28_v23 = vld [vmem:[%s847_s0 + $0x70] sm:$0xff] }
   0x6   :  { %v145_v12 = vadd.f32 %v144_v8, %v445_v4  ;;  %v29_v26 = vld [vmem:[%s847_s0 + $0x78] sm:$0xff]  ;;  %v30_v29 = vld [vmem:[%s847_s0 + $0x80] sm:$0xff]  ;;  %v31_v32 = vld [vmem:[%s847_s0 + $0x88] sm:$0xff] }
   0x7   :  { %v279_v18 = vmax.f32 %v25_v11, %v278_v14  ;;  %v32_v35 = vld [vmem:[%s847_s0 + $0x90] sm:$0xff]  ;;  %v33_v38 = vld [vmem:[%s847_s0 + $0x98] sm:$0xff]  ;;  %v34_v41 = vld [vmem:[%s847_s0 + $0xa0] sm:$0xff] }
   0x8   :  { %v146_v16 = vadd.f32 %v145_v12, %v460_v9  ;;  %v35_v44 = vld [vmem:[%s847_s0 + $0xa8] sm:$0xff]  ;;  %v36_v47 = vld [vmem:[%s847_s0 + $0xb0] sm:$0xff]  ;;  %v37_v50 = vld [vmem:[%s847_s0 + $0xb8] sm:$0xff] }
   0x9   :  { %v280_v22 = vmax.f32 %v26_v15, %v279_v18  ;;  %v38_v53 = vld [vmem:[%s847_s0 + $0xc0] sm:$0xff]  ;;  %v39_v56 = vld [vmem:[%s847_s0 + $0xc8] sm:$0xff]  ;;  %v40_v59 = vld [vmem:[%s847_s0 + $0xd0] sm:$0xff] }
   0xa   :  { %v147_v20 = vadd.f32 %v146_v16, %v469_v13  ;;  %v41_v62 = vld [vmem:[%s847_s0 + $0xd8] sm:$0xff]  ;;  %v43_v8 = vld [vmem:[%s847_s0 + $0xe8] sm:$0xff]  ;;  %v44_v12 = vld [vmem:[%s847_s0 + $0xf0] sm:$0xff] }
   0xb   :  { %v281_v25 = vmax.f32 %v27_v19, %v280_v22  ;;  %v45_v16 = vld [vmem:[%s847_s0 + $0xf8] sm:$0xff] }
   0xc   :  { %v148_v24 = vadd.f32 %v147_v20, %v478_v17  ;;  %v46_v20 = vld [vmem:[%s847_s0 + $0x100] sm:$0xff] }
   0xd   :  { %v282_v28 = vmax.f32 %v28_v23, %v281_v25 }
   0xe   :  { %v149_v27 = vadd.f32 %v148_v24, %v487_v21  ;;  %v47_v24 = vld [vmem:[%s847_s0 + $0x108] sm:$0xff] }
   0xf   :  { %v283_v31 = vmax.f32 %v29_v26, %v282_v28 }
  0x10   :  { %v150_v30 = vadd.f32 %v149_v27, %v22_v5  ;;  %v42_v5 = vld [vmem:[%s847_s0 + $0xe0] sm:$0xff]  ;;  %v48_v27 = vld [vmem:[%s847_s0 + $0x110] sm:$0xff] }
  0x11   :  { %v284_v34 = vmax.f32 %v30_v29, %v283_v31 }
  0x12   :  { %v151_v33 = vadd.f32 %v150_v30, %v23_v6  ;;  %v49_v30 = vld [vmem:[%s847_s0 + $0x118] sm:$0xff] }
  0x13   :  { %v285_v37 = vmax.f32 %v31_v32, %v284_v34 }
  0x14   :  { %v152_v36 = vadd.f32 %v151_v33, %v24_v7  ;;  %v50_v33 = vld [vmem:[%s847_s0 + $0x120] sm:$0xff] }
  0x15   :  { %v286_v40 = vmax.f32 %v32_v35, %v285_v37 }
  0x16   :  { %v153_v39 = vadd.f32 %v152_v36, %v25_v11  ;;  %v51_v36 = vld [vmem:[%s847_s0 + $0x128] sm:$0xff] }
  0x17   :  { %v287_v43 = vmax.f32 %v33_v38, %v286_v40 }
  0x18   :  { %v154_v42 = vadd.f32 %v153_v39, %v26_v15  ;;  %v52_v39 = vld [vmem:[%s847_s0 + $0x130] sm:$0xff] }
  0x19   :  { %v288_v46 = vmax.f32 %v34_v41, %v287_v43 }
  0x1a   :  { %v155_v45 = vadd.f32 %v154_v42, %v27_v19  ;;  %v53_v42 = vld [vmem:[%s847_s0 + $0x138] sm:$0xff] }
  0x1b   :  { %v289_v49 = vmax.f32 %v35_v44, %v288_v46 }
  0x1c   :  { %v156_v48 = vadd.f32 %v155_v45, %v28_v23  ;;  %v54_v45 = vld [vmem:[%s847_s0 + $0x140] sm:$0xff] }
  0x1d   :  { %v290_v52 = vmax.f32 %v36_v47, %v289_v49 }
  0x1e   :  { %v157_v51 = vadd.f32 %v156_v48, %v29_v26  ;;  %v55_v48 = vld [vmem:[%s847_s0 + $0x148] sm:$0xff] }
  0x1f   :  { %v291_v55 = vmax.f32 %v37_v50, %v290_v52 }
  0x20   :  { %v158_v54 = vadd.f32 %v157_v51, %v30_v29  ;;  %v56_v51 = vld [vmem:[%s847_s0 + $0x150] sm:$0xff] }
  0x21   :  { %v292_v58 = vmax.f32 %v38_v53, %v291_v55 }
  0x22   :  { %v159_v57 = vadd.f32 %v158_v54, %v31_v32  ;;  %v57_v54 = vld [vmem:[%s847_s0 + $0x158] sm:$0xff] }
  0x23   :  { %v293_v61 = vmax.f32 %v39_v56, %v292_v58 }
  0x24   :  { %v160_v60 = vadd.f32 %v159_v57, %v32_v35  ;;  %v58_v57 = vld [vmem:[%s847_s0 + $0x160] sm:$0xff] }
  0x25   :  { %v294_v3 = vmax.f32 %v40_v59, %v293_v61 }
  0x26   :  { %v161_v63 = vadd.f32 %v160_v60, %v33_v38  ;;  %v59_v60 = vld [vmem:[%s847_s0 + $0x168] sm:$0xff] }
  0x27   :  { %v295_v7 = vmax.f32 %v41_v62, %v294_v3 }
  0x28   :  { %v162_v6 = vadd.f32 %v161_v63, %v34_v41  ;;  %v60_v63 = vld [vmem:[%s847_s0 + $0x170] sm:$0xff] }
  0x29   :  { %v296_v11 = vmax.f32 %v42_v5, %v295_v7 }
  0x2a   :  { %v163_v10 = vadd.f32 %v162_v6, %v35_v44  ;;  %v61_v6 = vld [vmem:[%s847_s0 + $0x178] sm:$0xff] }
  0x2b   :  { %v297_v15 = vmax.f32 %v43_v8, %v296_v11 }
  0x2c   :  { %v164_v14 = vadd.f32 %v163_v10, %v36_v47  ;;  %v62_v10 = vld [vmem:[%s847_s0 + $0x180] sm:$0xff] }
  0x2d   :  { %v298_v19 = vmax.f32 %v44_v12, %v297_v15 }
  0x2e   :  { %v165_v18 = vadd.f32 %v164_v14, %v37_v50  ;;  %v63_v14 = vld [vmem:[%s847_s0 + $0x188] sm:$0xff] }
  0x2f   :  { %v299_v23 = vmax.f32 %v45_v16, %v298_v19 }
  0x30   :  { %v166_v22 = vadd.f32 %v165_v18, %v38_v53  ;;  %v64_v18 = vld [vmem:[%s847_s0 + $0x190] sm:$0xff] }
  0x31   :  { %v300_v26 = vmax.f32 %v46_v20, %v299_v23 }
  0x32   :  { %v167_v25 = vadd.f32 %v166_v22, %v39_v56  ;;  %v65_v22 = vld [vmem:[%s847_s0 + $0x198] sm:$0xff] }
  0x33   :  { %v301_v29 = vmax.f32 %v47_v24, %v300_v26 }
  0x34   :  { %v168_v28 = vadd.f32 %v167_v25, %v40_v59  ;;  %v66_v25 = vld [vmem:[%s847_s0 + $0x1a0] sm:$0xff] }
  0x35   :  { %v302_v32 = vmax.f32 %v48_v27, %v301_v29 }
  0x36   :  { %v169_v31 = vadd.f32 %v168_v28, %v41_v62  ;;  %v67_v28 = vld [vmem:[%s847_s0 + $0x1a8] sm:$0xff] }
  0x37   :  { %v303_v35 = vmax.f32 %v49_v30, %v302_v32 }
  0x38   :  { %v170_v34 = vadd.f32 %v169_v31, %v42_v5  ;;  %v68_v31 = vld [vmem:[%s847_s0 + $0x1b0] sm:$0xff] }
  0x39   :  { %v304_v38 = vmax.f32 %v50_v33, %v303_v35 }
  0x3a   :  { %v171_v37 = vadd.f32 %v170_v34, %v43_v8  ;;  %v69_v34 = vld [vmem:[%s847_s0 + $0x1b8] sm:$0xff] }
  0x3b   :  { %v305_v41 = vmax.f32 %v51_v36, %v304_v38 }
  0x3c   :  { %v172_v40 = vadd.f32 %v171_v37, %v44_v12  ;;  %v70_v37 = vld [vmem:[%s847_s0 + $0x1c0] sm:$0xff] }
  0x3d   :  { %v306_v44 = vmax.f32 %v52_v39, %v305_v41 }
  0x3e   :  { %v173_v43 = vadd.f32 %v172_v40, %v45_v16  ;;  %v71_v40 = vld [vmem:[%s847_s0 + $0x1c8] sm:$0xff] }
  0x3f   :  { %v307_v47 = vmax.f32 %v53_v42, %v306_v44 }
  0x40   :  { %v174_v46 = vadd.f32 %v173_v43, %v46_v20  ;;  %v72_v43 = vld [vmem:[%s847_s0 + $0x1d0] sm:$0xff] }
  0x41   :  { %v308_v50 = vmax.f32 %v54_v45, %v307_v47 }
  0x42   :  { %v175_v49 = vadd.f32 %v174_v46, %v47_v24  ;;  %v73_v46 = vld [vmem:[%s847_s0 + $0x1d8] sm:$0xff] }
  0x43   :  { %v309_v53 = vmax.f32 %v55_v48, %v308_v50 }
  0x44   :  { %v176_v52 = vadd.f32 %v175_v49, %v48_v27  ;;  %v74_v49 = vld [vmem:[%s847_s0 + $0x1e0] sm:$0xff] }
  0x45   :  { %v310_v56 = vmax.f32 %v56_v51, %v309_v53 }
  0x46   :  { %v177_v55 = vadd.f32 %v176_v52, %v49_v30  ;;  %v75_v52 = vld [vmem:[%s847_s0 + $0x1e8] sm:$0xff] }
  0x47   :  { %v311_v59 = vmax.f32 %v57_v54, %v310_v56 }
  0x48   :  { %v178_v58 = vadd.f32 %v177_v55, %v50_v33  ;;  %v76_v55 = vld [vmem:[%s847_s0 + $0x1f0] sm:$0xff] }
  0x49   :  { %v312_v62 = vmax.f32 %v58_v57, %v311_v59 }
  0x4a   :  { %v179_v61 = vadd.f32 %v178_v58, %v51_v36  ;;  %v77_v58 = vld [vmem:[%s847_s0 + $0x1f8] sm:$0xff] }
  0x4b   :  { %v313_v5 = vmax.f32 %v59_v60, %v312_v62 }
  0x4c   :  { %v180_v3 = vadd.f32 %v179_v61, %v52_v39  ;;  %v78_v61 = vld [vmem:[%s847_s0 + $0x200] sm:$0xff] }
  0x4d   :  { %v314_v8 = vmax.f32 %v60_v63, %v313_v5 }
  0x4e   :  { %v181_v7 = vadd.f32 %v180_v3, %v53_v42  ;;  %v79_v3 = vld [vmem:[%s847_s0 + $0x208] sm:$0xff] }
  0x4f   :  { %v315_v12 = vmax.f32 %v61_v6, %v314_v8 }
  0x50   :  { %v182_v11 = vadd.f32 %v181_v7, %v54_v45  ;;  %v80_v7 = vld [vmem:[%s847_s0 + $0x210] sm:$0xff] }
  0x51   :  { %v316_v16 = vmax.f32 %v62_v10, %v315_v12 }
  0x52   :  { %v183_v15 = vadd.f32 %v182_v11, %v55_v48  ;;  %v81_v11 = vld [vmem:[%s847_s0 + $0x218] sm:$0xff] }
  0x53   :  { %v317_v20 = vmax.f32 %v63_v14, %v316_v16 }
  0x54   :  { %v184_v19 = vadd.f32 %v183_v15, %v56_v51  ;;  %v82_v15 = vld [vmem:[%s847_s0 + $0x220] sm:$0xff] }
  0x55   :  { %v318_v24 = vmax.f32 %v64_v18, %v317_v20 }
  0x56   :  { %v185_v23 = vadd.f32 %v184_v19, %v57_v54  ;;  %v83_v19 = vld [vmem:[%s847_s0 + $0x228] sm:$0xff] }
  0x57   :  { %v319_v27 = vmax.f32 %v65_v22, %v318_v24 }
  0x58   :  { %v186_v26 = vadd.f32 %v185_v23, %v58_v57  ;;  %v84_v23 = vld [vmem:[%s847_s0 + $0x230] sm:$0xff] }
  0x59   :  { %v320_v30 = vmax.f32 %v66_v25, %v319_v27 }
  0x5a   :  { %v187_v29 = vadd.f32 %v186_v26, %v59_v60  ;;  %v85_v26 = vld [vmem:[%s847_s0 + $0x238] sm:$0xff] }
  0x5b   :  { %v321_v33 = vmax.f32 %v67_v28, %v320_v30 }
  0x5c   :  { %v188_v32 = vadd.f32 %v187_v29, %v60_v63  ;;  %v86_v29 = vld [vmem:[%s847_s0 + $0x240] sm:$0xff] }
  0x5d   :  { %v322_v36 = vmax.f32 %v68_v31, %v321_v33 }
  0x5e   :  { %v189_v35 = vadd.f32 %v188_v32, %v61_v6  ;;  %v87_v32 = vld [vmem:[%s847_s0 + $0x248] sm:$0xff] }
  0x5f   :  { %v323_v39 = vmax.f32 %v69_v34, %v322_v36 }
  0x60   :  { %v190_v38 = vadd.f32 %v189_v35, %v62_v10  ;;  %v88_v35 = vld [vmem:[%s847_s0 + $0x250] sm:$0xff] }
  0x61   :  { %v324_v42 = vmax.f32 %v70_v37, %v323_v39 }
  0x62   :  { %v191_v41 = vadd.f32 %v190_v38, %v63_v14  ;;  %v89_v38 = vld [vmem:[%s847_s0 + $0x258] sm:$0xff] }
  0x63   :  { %v325_v45 = vmax.f32 %v71_v40, %v324_v42 }
  0x64   :  { %v192_v44 = vadd.f32 %v191_v41, %v64_v18  ;;  %v90_v41 = vld [vmem:[%s847_s0 + $0x260] sm:$0xff] }
  0x65   :  { %v326_v48 = vmax.f32 %v72_v43, %v325_v45 }
  0x66   :  { %v193_v47 = vadd.f32 %v192_v44, %v65_v22  ;;  %v91_v44 = vld [vmem:[%s847_s0 + $0x268] sm:$0xff] }
  0x67   :  { %v327_v51 = vmax.f32 %v73_v46, %v326_v48 }
  0x68   :  { %v194_v50 = vadd.f32 %v193_v47, %v66_v25  ;;  %v92_v47 = vld [vmem:[%s847_s0 + $0x270] sm:$0xff] }
  0x69   :  { %v328_v54 = vmax.f32 %v74_v49, %v327_v51 }
  0x6a   :  { %v195_v53 = vadd.f32 %v194_v50, %v67_v28  ;;  %v93_v50 = vld [vmem:[%s847_s0 + $0x278] sm:$0xff] }
  0x6b   :  { %v329_v57 = vmax.f32 %v75_v52, %v328_v54 }
  0x6c   :  { %v196_v56 = vadd.f32 %v195_v53, %v68_v31  ;;  %v94_v53 = vld [vmem:[%s847_s0 + $0x280] sm:$0xff] }
  0x6d   :  { %v330_v60 = vmax.f32 %v76_v55, %v329_v57 }
  0x6e   :  { %v197_v59 = vadd.f32 %v196_v56, %v69_v34  ;;  %v95_v56 = vld [vmem:[%s847_s0 + $0x288] sm:$0xff] }
  0x6f   :  { %v331_v63 = vmax.f32 %v77_v58, %v330_v60 }
  0x70   :  { %v198_v62 = vadd.f32 %v197_v59, %v70_v37  ;;  %v96_v59 = vld [vmem:[%s847_s0 + $0x290] sm:$0xff] }
  0x71   :  { %v332_v6 = vmax.f32 %v78_v61, %v331_v63 }
  0x72   :  { %v199_v5 = vadd.f32 %v198_v62, %v71_v40  ;;  %v97_v62 = vld [vmem:[%s847_s0 + $0x298] sm:$0xff] }
  0x73   :  { %v333_v10 = vmax.f32 %v79_v3, %v332_v6 }
  0x74   :  { %v200_v8 = vadd.f32 %v199_v5, %v72_v43  ;;  %v98_v5 = vld [vmem:[%s847_s0 + $0x2a0] sm:$0xff] }
  0x75   :  { %v334_v14 = vmax.f32 %v80_v7, %v333_v10 }
  0x76   :  { %v201_v12 = vadd.f32 %v200_v8, %v73_v46  ;;  %v99_v8 = vld [vmem:[%s847_s0 + $0x2a8] sm:$0xff] }
  0x77   :  { %v335_v18 = vmax.f32 %v81_v11, %v334_v14 }
  0x78   :  { %v202_v16 = vadd.f32 %v201_v12, %v74_v49  ;;  %v100_v12 = vld [vmem:[%s847_s0 + $0x2b0] sm:$0xff] }
  0x79   :  { %v336_v22 = vmax.f32 %v82_v15, %v335_v18 }
  0x7a   :  { %v203_v20 = vadd.f32 %v202_v16, %v75_v52  ;;  %v101_v16 = vld [vmem:[%s847_s0 + $0x2b8] sm:$0xff] }
  0x7b   :  { %v337_v25 = vmax.f32 %v83_v19, %v336_v22 }
  0x7c   :  { %v204_v24 = vadd.f32 %v203_v20, %v76_v55  ;;  %v102_v20 = vld [vmem:[%s847_s0 + $0x2c0] sm:$0xff] }
  0x7d   :  { %v338_v28 = vmax.f32 %v84_v23, %v337_v25 }
  0x7e   :  { %v205_v27 = vadd.f32 %v204_v24, %v77_v58  ;;  %v103_v24 = vld [vmem:[%s847_s0 + $0x2c8] sm:$0xff] }
  0x7f   :  { %v339_v31 = vmax.f32 %v85_v26, %v338_v28 }
  0x80   :  { %v206_v30 = vadd.f32 %v205_v27, %v78_v61  ;;  %v104_v27 = vld [vmem:[%s847_s0 + $0x2d0] sm:$0xff] }
  0x81   :  { %v340_v34 = vmax.f32 %v86_v29, %v339_v31 }
  0x82   :  { %v207_v33 = vadd.f32 %v206_v30, %v79_v3  ;;  %v105_v30 = vld [vmem:[%s847_s0 + $0x2d8] sm:$0xff] }
  0x83   :  { %v341_v37 = vmax.f32 %v87_v32, %v340_v34 }
  0x84   :  { %v208_v36 = vadd.f32 %v207_v33, %v80_v7  ;;  %v106_v33 = vld [vmem:[%s847_s0 + $0x2e0] sm:$0xff] }
  0x85   :  { %v342_v40 = vmax.f32 %v88_v35, %v341_v37 }
  0x86   :  { %v209_v39 = vadd.f32 %v208_v36, %v81_v11  ;;  %v107_v36 = vld [vmem:[%s847_s0 + $0x2e8] sm:$0xff] }
  0x87   :  { %v343_v43 = vmax.f32 %v89_v38, %v342_v40 }
  0x88   :  { %v210_v42 = vadd.f32 %v209_v39, %v82_v15  ;;  %v108_v39 = vld [vmem:[%s847_s0 + $0x2f0] sm:$0xff] }
  0x89   :  { %v344_v46 = vmax.f32 %v90_v41, %v343_v43 }
  0x8a   :  { %v211_v45 = vadd.f32 %v210_v42, %v83_v19  ;;  %v109_v42 = vld [vmem:[%s847_s0 + $0x2f8] sm:$0xff] }
  0x8b   :  { %v345_v49 = vmax.f32 %v91_v44, %v344_v46 }
  0x8c   :  { %v212_v48 = vadd.f32 %v211_v45, %v84_v23  ;;  %v110_v45 = vld [vmem:[%s847_s0 + $0x300] sm:$0xff] }
  0x8d   :  { %v346_v52 = vmax.f32 %v92_v47, %v345_v49 }
  0x8e   :  { %v213_v51 = vadd.f32 %v212_v48, %v85_v26  ;;  %v111_v48 = vld [vmem:[%s847_s0 + $0x308] sm:$0xff] }
  0x8f   :  { %v347_v55 = vmax.f32 %v93_v50, %v346_v52 }
  0x90   :  { %v214_v54 = vadd.f32 %v213_v51, %v86_v29  ;;  %v112_v51 = vld [vmem:[%s847_s0 + $0x310] sm:$0xff] }
  0x91   :  { %v348_v58 = vmax.f32 %v94_v53, %v347_v55 }
  0x92   :  { %v215_v57 = vadd.f32 %v214_v54, %v87_v32  ;;  %v113_v54 = vld [vmem:[%s847_s0 + $0x318] sm:$0xff] }
  0x93   :  { %v349_v61 = vmax.f32 %v95_v56, %v348_v58 }
  0x94   :  { %v216_v60 = vadd.f32 %v215_v57, %v88_v35  ;;  %v114_v57 = vld [vmem:[%s847_s0 + $0x320] sm:$0xff] }
  0x95   :  { %v350_v3 = vmax.f32 %v96_v59, %v349_v61 }
  0x96   :  { %v217_v63 = vadd.f32 %v216_v60, %v89_v38  ;;  %v115_v60 = vld [vmem:[%s847_s0 + $0x328] sm:$0xff] }
  0x97   :  { %v351_v7 = vmax.f32 %v97_v62, %v350_v3 }
  0x98   :  { %v218_v6 = vadd.f32 %v217_v63, %v90_v41  ;;  %v116_v63 = vld [vmem:[%s847_s0 + $0x330] sm:$0xff] }
  0x99   :  { %v352_v11 = vmax.f32 %v98_v5, %v351_v7 }
  0x9a   :  { %v219_v10 = vadd.f32 %v218_v6, %v91_v44  ;;  %v117_v6 = vld [vmem:[%s847_s0 + $0x338] sm:$0xff] }
  0x9b   :  { %v353_v15 = vmax.f32 %v99_v8, %v352_v11 }
  0x9c   :  { %v220_v14 = vadd.f32 %v219_v10, %v92_v47  ;;  %v118_v10 = vld [vmem:[%s847_s0 + $0x340] sm:$0xff] }
  0x9d   :  { %v354_v19 = vmax.f32 %v100_v12, %v353_v15 }
  0x9e   :  { %v221_v18 = vadd.f32 %v220_v14, %v93_v50  ;;  %v119_v14 = vld [vmem:[%s847_s0 + $0x348] sm:$0xff] }
  0x9f   :  { %v355_v23 = vmax.f32 %v101_v16, %v354_v19 }
  0xa0   :  { %v222_v22 = vadd.f32 %v221_v18, %v94_v53  ;;  %v120_v18 = vld [vmem:[%s847_s0 + $0x350] sm:$0xff] }
  0xa1   :  { %v356_v26 = vmax.f32 %v102_v20, %v355_v23 }
  0xa2   :  { %v223_v25 = vadd.f32 %v222_v22, %v95_v56  ;;  %v121_v22 = vld [vmem:[%s847_s0 + $0x358] sm:$0xff] }
  0xa3   :  { %v357_v29 = vmax.f32 %v103_v24, %v356_v26 }
  0xa4   :  { %v224_v28 = vadd.f32 %v223_v25, %v96_v59  ;;  %v122_v25 = vld [vmem:[%s847_s0 + $0x360] sm:$0xff] }
  0xa5   :  { %v358_v32 = vmax.f32 %v104_v27, %v357_v29 }
  0xa6   :  { %v225_v31 = vadd.f32 %v224_v28, %v97_v62  ;;  %v123_v28 = vld [vmem:[%s847_s0 + $0x368] sm:$0xff] }
  0xa7   :  { %v359_v35 = vmax.f32 %v105_v30, %v358_v32 }
  0xa8   :  { %v226_v34 = vadd.f32 %v225_v31, %v98_v5  ;;  %v124_v31 = vld [vmem:[%s847_s0 + $0x370] sm:$0xff] }
  0xa9   :  { %v360_v38 = vmax.f32 %v106_v33, %v359_v35 }
  0xaa   :  { %v227_v37 = vadd.f32 %v226_v34, %v99_v8  ;;  %v125_v34 = vld [vmem:[%s847_s0 + $0x378] sm:$0xff] }
  0xab   :  { %v361_v41 = vmax.f32 %v107_v36, %v360_v38 }
  0xac   :  { %v228_v40 = vadd.f32 %v227_v37, %v100_v12  ;;  %v126_v37 = vld [vmem:[%s847_s0 + $0x380] sm:$0xff] }
  0xad   :  { %v362_v44 = vmax.f32 %v108_v39, %v361_v41 }
  0xae   :  { %v229_v43 = vadd.f32 %v228_v40, %v101_v16  ;;  %v127_v40 = vld [vmem:[%s847_s0 + $0x388] sm:$0xff] }
  0xaf   :  { %v363_v47 = vmax.f32 %v109_v42, %v362_v44 }
  0xb0   :  { %v230_v46 = vadd.f32 %v229_v43, %v102_v20  ;;  %v128_v43 = vld [vmem:[%s847_s0 + $0x390] sm:$0xff] }
  0xb1   :  { %v364_v50 = vmax.f32 %v110_v45, %v363_v47 }
  0xb2   :  { %v231_v49 = vadd.f32 %v230_v46, %v103_v24  ;;  %v129_v46 = vld [vmem:[%s847_s0 + $0x398] sm:$0xff] }
  0xb3   :  { %v365_v53 = vmax.f32 %v111_v48, %v364_v50 }
  0xb4   :  { %v232_v52 = vadd.f32 %v231_v49, %v104_v27  ;;  %v130_v49 = vld [vmem:[%s847_s0 + $0x3a0] sm:$0xff] }
  0xb5   :  { %v366_v56 = vmax.f32 %v112_v51, %v365_v53 }
  0xb6   :  { %v233_v55 = vadd.f32 %v232_v52, %v105_v30  ;;  %v131_v52 = vld [vmem:[%s847_s0 + $0x3a8] sm:$0xff] }
  0xb7   :  { %v367_v59 = vmax.f32 %v113_v54, %v366_v56 }
  0xb8   :  { %v234_v58 = vadd.f32 %v233_v55, %v106_v33  ;;  %v132_v55 = vld [vmem:[%s847_s0 + $0x3b0] sm:$0xff] }
  0xb9   :  { %v368_v62 = vmax.f32 %v114_v57, %v367_v59 }
  0xba   :  { %v235_v61 = vadd.f32 %v234_v58, %v107_v36  ;;  %v133_v58 = vld [vmem:[%s847_s0 + $0x3b8] sm:$0xff] }
  0xbb   :  { %v369_v5 = vmax.f32 %v115_v60, %v368_v62 }
  0xbc   :  { %v236_v3 = vadd.f32 %v235_v61, %v108_v39  ;;  %v134_v61 = vld [vmem:[%s847_s0 + $0x3c0] sm:$0xff] }
  0xbd   :  { %v370_v8 = vmax.f32 %v116_v63, %v369_v5 }
  0xbe   :  { %v237_v7 = vadd.f32 %v236_v3, %v109_v42  ;;  %v135_v3 = vld [vmem:[%s847_s0 + $0x3c8] sm:$0xff] }
  0xbf   :  { %v371_v12 = vmax.f32 %v117_v6, %v370_v8 }
  0xc0   :  { %v238_v11 = vadd.f32 %v237_v7, %v110_v45  ;;  %v136_v7 = vld [vmem:[%s847_s0 + $0x3d0] sm:$0xff] }
  0xc1   :  { %v372_v16 = vmax.f32 %v118_v10, %v371_v12 }
  0xc2   :  { %v239_v15 = vadd.f32 %v238_v11, %v111_v48  ;;  %v137_v11 = vld [vmem:[%s847_s0 + $0x3d8] sm:$0xff] }
  0xc3   :  { %v373_v20 = vmax.f32 %v119_v14, %v372_v16 }
  0xc4   :  { %v240_v19 = vadd.f32 %v239_v15, %v112_v51  ;;  %v138_v15 = vld [vmem:[%s847_s0 + $0x3e0] sm:$0xff] }
  0xc5   :  { %v374_v24 = vmax.f32 %v120_v18, %v373_v20 }
  0xc6   :  { %v241_v23 = vadd.f32 %v240_v19, %v113_v54  ;;  %v139_v19 = vld [vmem:[%s847_s0 + $0x3e8] sm:$0xff] }
  0xc7   :  { %v375_v27 = vmax.f32 %v121_v22, %v374_v24 }
  0xc8   :  { %v242_v26 = vadd.f32 %v241_v23, %v114_v57  ;;  %v140_v23 = vld [vmem:[%s847_s0 + $0x3f0] sm:$0xff] }
  0xc9   :  { %v376_v30 = vmax.f32 %v122_v25, %v375_v27 }
  0xca   :  { %v243_v29 = vadd.f32 %v242_v26, %v115_v60  ;;  %v141_v26 = vld [vmem:[%s847_s0 + $0x3f8] sm:$0xff] }
  0xcb   :  { %v377_v33 = vmax.f32 %v123_v28, %v376_v30 }
  0xcc   :  { %v244_v32 = vadd.f32 %v243_v29, %v116_v63  ;;  %v273_v29 = vmax.f32 %v428_v0, %v460_v9 }
  0xcd   :  { %v378_v36 = vmax.f32 %v124_v31, %v377_v33 }
  0xce   :  { %v245_v35 = vadd.f32 %v244_v32, %v117_v6  ;;  %v274_v32 = vmax.f32 %v433_v1, %v469_v13 }
  0xcf   :  { %v379_v39 = vmax.f32 %v125_v34, %v378_v36 }
  0xd0   :  { %v246_v38 = vadd.f32 %v245_v35, %v118_v10  ;;  %v275_v35 = vmax.f32 %v438_v2, %v478_v17 }
  0xd1   :  { %v380_v42 = vmax.f32 %v126_v37, %v379_v39 }
  0xd2   :  { %v247_v41 = vadd.f32 %v246_v38, %v119_v14  ;;  %v276_v38 = vmax.f32 %v445_v4, %v487_v21 }
  0xd3   :  { %v381_v45 = vmax.f32 %v127_v40, %v380_v42 }
  0xd4   :  { %v248_v44 = vadd.f32 %v247_v41, %v120_v18 }
  0xd5   :  { %v382_v48 = vmax.f32 %v128_v43, %v381_v45 }
  0xd6   :  { %v249_v47 = vadd.f32 %v248_v44, %v121_v22 }
  0xd7   :  { %v383_v51 = vmax.f32 %v129_v46, %v382_v48 }
  0xd8   :  { %v250_v50 = vadd.f32 %v249_v47, %v122_v25 }
  0xd9   :  { %v384_v54 = vmax.f32 %v130_v49, %v383_v51 }
  0xda   :  { %v251_v53 = vadd.f32 %v250_v50, %v123_v28 }
  0xdb   :  { %v385_v57 = vmax.f32 %v131_v52, %v384_v54 }
  0xdc   :  { %v252_v56 = vadd.f32 %v251_v53, %v124_v31 }
  0xdd   :  { %v386_v60 = vmax.f32 %v132_v55, %v385_v57 }
  0xde   :  { %v253_v59 = vadd.f32 %v252_v56, %v125_v34 }
  0xdf   :  { %v387_v63 = vmax.f32 %v133_v58, %v386_v60 }
  0xe0   :  { %v254_v62 = vadd.f32 %v253_v59, %v126_v37 }
  0xe1   :  { %v388_v6 = vmax.f32 %v134_v61, %v387_v63 }
  0xe2   :  { %v255_v5 = vadd.f32 %v254_v62, %v127_v40 }
  0xe3   :  { %v389_v10 = vmax.f32 %v135_v3, %v388_v6 }
  0xe4   :  { %v256_v8 = vadd.f32 %v255_v5, %v128_v43 }
  0xe5   :  { %v390_v14 = vmax.f32 %v136_v7, %v389_v10 }
  0xe6   :  { %v257_v12 = vadd.f32 %v256_v8, %v129_v46 }
  0xe7   :  { %v391_v18 = vmax.f32 %v137_v11, %v390_v14 }
  0xe8   :  { %v258_v16 = vadd.f32 %v257_v12, %v130_v49 }
  0xe9   :  { %v392_v22 = vmax.f32 %v138_v15, %v391_v18 }
  0xea   :  { %v259_v20 = vadd.f32 %v258_v16, %v131_v52 }
  0xeb   :  { %v393_v25 = vmax.f32 %v139_v19, %v392_v22 }
  0xec   :  { %v260_v24 = vadd.f32 %v259_v20, %v132_v55 }
  0xed   :  { %v394_v28 = vmax.f32 %v140_v23, %v393_v25 }
  0xee   :  { %v261_v27 = vadd.f32 %v260_v24, %v133_v58 }
  0xef   :  { %v395_v31 = vmax.f32 %v141_v26, %v394_v28 }
  0xf0   :  { %v262_v30 = vadd.f32 %v261_v27, %v134_v61 }
  0xf1   :  { %v396_v34 = vmax.f32 %v273_v29, %v395_v31 }
  0xf2   :  { %v263_v33 = vadd.f32 %v262_v30, %v135_v3 }
  0xf3   :  { %v397_v37 = vmax.f32 %v274_v32, %v396_v34 }
  0xf4   :  { %v264_v36 = vadd.f32 %v263_v33, %v136_v7 }
  0xf5   :  { %v398_v40 = vmax.f32 %v275_v35, %v397_v37 }
  0xf6   :  { %v265_v39 = vadd.f32 %v264_v36, %v137_v11 }
  0xf7   :  { %v399_v42 = vmax.f32 %v276_v38, %v398_v40 }
  0xf8   :  { %v266_v41 = vadd.f32 %v265_v39, %v138_v15 }
  0xf9   :  { %414 = vst [vmem:[%s848_s1 + $0x8] sm:$0xff] %v399_v42 }
  0xfa   :  { %v267_v0 = vadd.f32 %v266_v41, %v139_v19 }
  0xfc   :  { %v268_v1 = vadd.f32 %v267_v0, %v140_v23 }
  0xfe   :  { %v269_v9 = vadd.f32 %v268_v1, %v141_v26 }
 0x100   :  { %406 = vst [vmem:[%s848_s1] sm:$0xff] %v269_v9 }

</bundles_post_ra>
